<compile_context>
chip_gen: v5e
topology: v5e:2x2
jax: 0.10.0
libtpu: 0.0.40
codegen_flags: <defaults>
</compile_context>

<pallas_src>
import jax
import jax.numpy as jnp
from jax import lax
from jax.experimental import pallas as pl
from jax.experimental.pallas import tpu as pltpu

DEFAULT_EPS = 1e-10
PADDED_Y_VALUE = -1.0
_NEG_BIG = -1e30  # finite stand-in for -inf (exp underflows to exactly 0)


def _listmle_kernel(batch_total: int):
    """Kernel closure with the total batch size (for the final mean) baked in."""

    def kernel(preds_ref, mask_ref, out_ref, acc_ref):
        i = pl.program_id(0)

        @pl.when(i == 0)
        def _():
            acc_ref[...] = jnp.zeros_like(acc_ref)

        preds = preds_ref[...]                       # (TB, L) f32, sorted by y_true desc
        mask = mask_ref[...] > jnp.float32(0.5)      # (TB, L) bool, True = padded item
        tb, slate = preds.shape

        p = jnp.where(mask, jnp.float32(_NEG_BIG), preds)
        m = jnp.max(p, axis=-1, keepdims=True)
        pm = p - m                                   # <= 0; ~-1e30 on padded slots
        e = jnp.exp(pm)                              # exactly 0 on padded slots

        # Reverse cumulative sum along the slate axis via a lower-triangular
        # ones matmul on the MXU:  cumsums[:, j] = sum_{k >= j} e[:, k].
        k_idx = lax.broadcasted_iota(jnp.int32, (slate, slate), 0)
        j_idx = lax.broadcasted_iota(jnp.int32, (slate, slate), 1)
        tri = (k_idx >= j_idx).astype(jnp.float32)
        cumsums = jnp.dot(e, tri, preferred_element_type=jnp.float32)

        obs = jnp.log(cumsums + jnp.float32(DEFAULT_EPS)) - pm
        obs = jnp.where(mask, jnp.float32(0.0), obs)

        # Elementwise (VPU) accumulation into an (8,128) vector accumulator;
        # the single expensive cross-lane reduction is deferred to the last
        # grid step.
        if tb == 8 and slate == 128:
            acc_ref[...] += obs
        else:
            acc_ref[...] += obs.reshape(tb // 8, 8, slate // 128, 128).sum(axis=(0, 2))

        @pl.when(i == pl.num_programs(0) - 1)
        def _():
            total = jnp.sum(acc_ref[...], keepdims=True)      # (1, 1)
            out_ref[...] = total * jnp.float32(1.0 / batch_total)

    return kernel


def _sort_by_true(y_pred, y_true, key):
    """Mirrors the PyTorch module's shuffle + descending sort + gather."""
    slate = y_pred.shape[-1]
    random_indices = jax.random.permutation(key, slate)
    y_pred_shuffled = y_pred[:, random_indices]
    y_true_shuffled = y_true[:, random_indices]
    indices = jnp.argsort(-y_true_shuffled, axis=-1)          # descending, stable
    y_true_sorted = jnp.take_along_axis(y_true_shuffled, indices, axis=-1)
    preds_sorted = jnp.take_along_axis(y_pred_shuffled, indices, axis=-1)
    mask = y_true_sorted == jnp.float32(PADDED_Y_VALUE)
    return preds_sorted.astype(jnp.float32), mask


def listmle_loss(y_pred, y_true, key) -> jax.Array:
    """Pallas TPU implementation of ListMLE.forward (returns scalar f32)."""
    # TODO(synk): the shuffle/sort/gather (data-dependent permutation) stays in
    # the JAX wrapper; only the post-sort listwise loss runs in the kernel.
    preds_sorted, mask = _sort_by_true(y_pred, y_true, key)
    batch, slate = preds_sorted.shape

    # TODO(synk): general shapes need a remainder tile with in-kernel masking;
    # padding rows/columns here would bias the mean.
    assert batch % 8 == 0, "batch must be a multiple of 8"
    assert slate % 128 == 0, "slate length must be a multiple of 128"

    # Large lane-dense row tiles (memory-bound): target ~2 MiB per input block,
    # falling back to the whole batch for small inputs (grid=(1,)).
    tile_rows = batch
    max_rows = max(8, (2 * 1024 * 1024) // (slate * 4) // 8 * 8)
    if tile_rows > max_rows:
        tile_rows = max_rows
        while batch % tile_rows != 0:
            tile_rows -= 8
    grid = (batch // tile_rows,)

    mask_f32 = mask.astype(jnp.float32)

    cost = pl.CostEstimate(
        flops=2 * batch * slate * slate + 10 * batch * slate,
        transcendentals=2 * batch * slate,
        bytes_accessed=2 * batch * slate * 4 + 4,
    )

    out = pl.pallas_call(
        _listmle_kernel(batch),
        out_shape=jax.ShapeDtypeStruct((1, 1), jnp.float32),
        grid_spec=pltpu.PrefetchScalarGridSpec(
            num_scalar_prefetch=0,
            grid=grid,
            in_specs=[
                pl.BlockSpec((tile_rows, slate), lambda i: (i, 0)),
                pl.BlockSpec((tile_rows, slate), lambda i: (i, 0)),
            ],
            out_specs=pl.BlockSpec((1, 1), lambda i: (0, 0)),
            scratch_shapes=[pltpu.VMEM((8, 128), jnp.float32)],
        ),
        compiler_params=pltpu.CompilerParams(
            dimension_semantics=("arbitrary",),
        ),
        cost_estimate=cost,
    )(preds_sorted, mask_f32)

    return out[0, 0]


def listmle_loss_ref(y_pred, y_true, key) -> jax.Array:
    """Pure-JAX reference mirroring the PyTorch module."""
    preds_sorted, mask = _sort_by_true(y_pred, y_true, key)
    p = jnp.where(mask, -jnp.inf, preds_sorted)
    m = jnp.max(p, axis=1, keepdims=True)
    pm = p - m
    cums = jnp.flip(jnp.cumsum(jnp.flip(jnp.exp(pm), axis=1), axis=1), axis=1)
    obs = jnp.log(cums + DEFAULT_EPS) - pm
    obs = jnp.where(mask, 0.0, obs)
    return jnp.mean(jnp.sum(obs, axis=1))


if __name__ == "__main__":
    key = jax.random.PRNGKey(0)
    k_perm, k_pred, k_true = jax.random.split(key, 3)

    # [batch_size, slate_length] = [8, 128]; relevance labels in {0..4} with
    # a few padded (-1) items at the tail of some slates.
    batch, slate = 8, 128
    y_pred = jax.random.normal(k_pred, (batch, slate), dtype=jnp.float32)
    y_true = jax.random.randint(k_true, (batch, slate), 0, 5).astype(jnp.float32)
    y_true = y_true.at[0, 100:].set(PADDED_Y_VALUE)
    y_true = y_true.at[1, 90:].set(PADDED_Y_VALUE)

    loss = listmle_loss(y_pred, y_true, k_perm)
    jax.block_until_ready(loss)

    ref = listmle_loss_ref(y_pred, y_true, k_perm)
    assert jnp.allclose(loss, ref, rtol=1e-4, atol=1e-4), (loss, ref)

    print("KERNEL_OK")
</pallas_src>

<mosaic_0001>
module attributes {stable_mosaic.version = 11 : i64} {
  func.func @kernel(%arg0: i32, %arg1: memref<8x128xf32, #tpu.memory_space<vmem>>, %arg2: memref<8x128xf32, #tpu.memory_space<vmem>>, %arg3: memref<1x1xf32, #tpu.memory_space<vmem>>, %arg4: memref<8x128xf32, #tpu.memory_space<vmem>>) attributes {dimension_semantics = [#tpu.dimension_semantics<arbitrary>], iteration_bounds = array<i64: 1>, scalar_prefetch = 0 : i64, scratch_operands = 1 : i64, tpu.core_type = #tpu.core_type<tc>, window_params = [{transform_indices = @transform_0, window_bounds = array<i64: 8, 128>}, {transform_indices = @transform_1, window_bounds = array<i64: 8, 128>}, {pipeline_mode = #tpu.pipeline_mode<synchronous>, transform_indices = @transform_2, window_bounds = array<i64: 1, 1>}]} {
    %c0_i32 = arith.constant 0 : i32
    %0 = arith.cmpi eq, %arg0, %c0_i32 : i32
    %1 = arith.extui %0 : i1 to i32
    %c0_i32_0 = arith.constant 0 : i32
    %2 = arith.cmpi ne, %1, %c0_i32_0 : i32
    scf.if %2 {
      %cst_15 = arith.constant 0.000000e+00 : f32
      %32 = vector.broadcast %cst_15 : f32 to vector<8x128xf32>
      %c0_16 = arith.constant 0 : index
      %c0_17 = arith.constant 0 : index
      %33 = vector.load %arg4[%c0_16, %c0_17] : memref<8x128xf32, #tpu.memory_space<vmem>>, vector<8x128xf32>
      tpu.vector_store %arg4[%c0_16, %c0_17], %32 {strides = array<i32>} : memref<8x128xf32, #tpu.memory_space<vmem>>, vector<8x128xf32>,
    } else {
    }
    %c0 = arith.constant 0 : index
    %c0_1 = arith.constant 0 : index
    %3 = vector.load %arg1[%c0, %c0_1] : memref<8x128xf32, #tpu.memory_space<vmem>>, vector<8x128xf32>
    %c0_2 = arith.constant 0 : index
    %c0_3 = arith.constant 0 : index
    %4 = vector.load %arg2[%c0_2, %c0_3] : memref<8x128xf32, #tpu.memory_space<vmem>>, vector<8x128xf32>
    %cst = arith.constant 5.000000e-01 : f32
    %5 = vector.broadcast %cst : f32 to vector<8x128xf32>
    %6 = arith.cmpf ogt, %4, %5 : vector<8x128xf32>
    %cst_4 = arith.constant -1.000000e+30 : f32
    %7 = vector.broadcast %cst_4 : f32 to vector<8x128xf32>
    %8 = arith.select %6, %7, %3 : vector<8x128xi1>, vector<8x128xf32>
    %cst_5 = arith.constant dense<0xFF800000> : vector<8xf32>
    %9 = vector.multi_reduction <maximumf>, %8, %cst_5 [1] : vector<8x128xf32> to vector<8xf32>
    %10 = vector.shape_cast %9 : vector<8xf32> to vector<8x1xf32>
    %11 = vector.broadcast %10 : vector<8x1xf32> to vector<8x128xf32>
    %12 = arith.subf %8, %11 : vector<8x128xf32>
    %13 = math.exp %12 : vector<8x128xf32>
    %14 = tpu.iota {dimensions = array<i32: 0>} : vector<128x128xi32>
    %15 = tpu.iota {dimensions = array<i32: 1>} : vector<128x128xi32>
    %16 = arith.cmpi sge, %14, %15 : vector<128x128xi32>
    %17 = arith.extui %16 : vector<128x128xi1> to vector<128x128xi32>
    %18 = arith.sitofp %17 : vector<128x128xi32> to vector<128x128xf32>
    %cst_6 = arith.constant dense<0.000000e+00> : vector<8x128xf32>
    %19 = tpu.matmul %13, %18, %cst_6 {dimension_numbers = #tpu.dot_dimension_numbers<[1], [0], [0], [1], [0, 0, 1, 1], [], []>} : vector<8x128xf32>, vector<128x128xf32>, vector<8x128xf32> -> vector<8x128xf32>
    %cst_7 = arith.constant 1.000000e-10 : f32
    %20 = vector.broadcast %cst_7 : f32 to vector<8x128xf32>
    %21 = arith.addf %19, %20 : vector<8x128xf32>
    %22 = math.log %21 : vector<8x128xf32>
    %23 = arith.subf %22, %12 : vector<8x128xf32>
    %cst_8 = arith.constant 0.000000e+00 : f32
    %24 = vector.broadcast %cst_8 : f32 to vector<8x128xf32>
    %25 = arith.select %6, %24, %23 : vector<8x128xi1>, vector<8x128xf32>
    %c0_9 = arith.constant 0 : index
    %c0_10 = arith.constant 0 : index
    %26 = vector.load %arg4[%c0_9, %c0_10] : memref<8x128xf32, #tpu.memory_space<vmem>>, vector<8x128xf32>
    %27 = arith.addf %26, %25 : vector<8x128xf32>
    %c0_11 = arith.constant 0 : index
    %c0_12 = arith.constant 0 : index
    %28 = vector.load %arg4[%c0_11, %c0_12] : memref<8x128xf32, #tpu.memory_space<vmem>>, vector<8x128xf32>
    tpu.vector_store %arg4[%c0_11, %c0_12], %27 {strides = array<i32>} : memref<8x128xf32, #tpu.memory_space<vmem>>, vector<8x128xf32>,
    %c0_i32_13 = arith.constant 0 : i32
    %29 = arith.cmpi eq, %arg0, %c0_i32_13 : i32
    %30 = arith.extui %29 : i1 to i32
    %c0_i32_14 = arith.constant 0 : i32
    %31 = arith.cmpi ne, %30, %c0_i32_14 : i32
    scf.if %31 {
      %c0_15 = arith.constant 0 : index
      %c0_16 = arith.constant 0 : index
      %32 = vector.load %arg4[%c0_15, %c0_16] : memref<8x128xf32, #tpu.memory_space<vmem>>, vector<8x128xf32>
      %33 = vector.shape_cast %32 : vector<8x128xf32> to vector<1x8x128xf32>
      %cst_17 = arith.constant dense<0.000000e+00> : vector<1xf32>
      %34 = vector.multi_reduction <add>, %33, %cst_17 [1, 2] : vector<1x8x128xf32> to vector<1xf32>
      %35 = vector.shape_cast %34 : vector<1xf32> to vector<1x1x1xf32>
      %36 = vector.extract %35[0, 0, 0] : f32 from vector<1x1x1xf32>
      %37 = vector.broadcast %36 : f32 to vector<1x1xf32>
      %cst_18 = arith.constant 1.250000e-01 : f32
      %38 = vector.broadcast %cst_18 : f32 to vector<1x1xf32>
      %39 = arith.mulf %37, %38 : vector<1x1xf32>
      %c0_19 = arith.constant 0 : index
      %c0_20 = arith.constant 0 : index
      %40 = vector.load %arg3[%c0_19, %c0_20] : memref<1x1xf32, #tpu.memory_space<vmem>>, vector<1x1xf32>
      tpu.vector_store %arg3[%c0_19, %c0_20], %39 {strides = array<i32>} : memref<1x1xf32, #tpu.memory_space<vmem>>, vector<1x1xf32>,
    } else {
    }
    return
  }
  func.func @transform_0(%arg0: i32) -> (i32, i32) {
    %c0_i32 = arith.constant 0 : i32
    %c0_i32_0 = arith.constant 0 : i32
    return %arg0, %c0_i32 : i32, i32
  }
  func.func @transform_1(%arg0: i32) -> (i32, i32) {
    %c0_i32 = arith.constant 0 : i32
    %c0_i32_0 = arith.constant 0 : i32
    return %arg0, %c0_i32 : i32, i32
  }
  func.func @transform_2(%arg0: i32) -> (i32, i32) {
    %c0_i32 = arith.constant 0 : i32
    %c0_i32_0 = arith.constant 0 : i32
    %c0_i32_1 = arith.constant 0 : i32
    return %c0_i32, %c0_i32_0 : i32, i32
  }
}

</mosaic_0001>

<bundles_post_ra>
// kernel: tpu_custom_call.1
= control target key start
LH: loop header
LB: loop body
LE: loop exit
PB: predicated region body
PF: predicated region fallthrough
CT: control target
= control target key end

     0   :  { %7 = vsyncpa [#allocation4], 0  ;;  %s333_s0 = inlined_call_operand.hbm [shape: f32[8,128], index: 0, kind: input, shape index: {}]   ;;  %s334_s1 = inlined_call_operand.hbm [shape: f32[8,128], index: 1, kind: input, shape index: {}]   ;;  %s335_s2 = inlined_call_operand.hbm [shape: f32[1,1], index: 2, kind: output, shape index: {}]  }
   0x1   :  { %8 = vsyncpa [#allocation7], 0 }
   0x2   :  { %9 = vsyncpa [#allocation5], 0  ;;  %s15_s11 = sshll.u32 %s333_s0, 4  ;;  %s303_s12 = smov [#allocation3]   ;;  %s16_s11 = int_to_ptr.hbm [resolvable:$true] %s15_s11 }
   0x3   :  { %s17_s13 = sshll.u32 %s303_s12, 4  ;;  %s26_s16 = sshll.u32 %s334_s1, 4  ;;  %s18_s13 = int_to_ptr.vmem [resolvable:$true] %s17_s13  ;;  %s27_s16 = int_to_ptr.hbm [resolvable:$true] %s26_s16 }
   0x4   :  { %20 = dma.hbm_to_vmem [thread:$0]  %s16_s11, 128, %s18_s13, [#allocation4]  }
   0x5   :  { %s304_s17 = smov [#allocation6]  }
   0x6   :  { %s28_s18 = sshll.u32 %s304_s17, 4  ;;  %s29_s18 = int_to_ptr.vmem [resolvable:$true] %s28_s18 }
   0x7   :  { %31 = dma.hbm_to_vmem [thread:$0]  %s27_s16, 128, %s29_s18, [#allocation7]  }
   0x8   :  { %297 = dma.done.wait [#allocation4], 128  }
   0x9   :  { %298 = vsyncadd [#allocation4], 4294967168 }
   0xa   :  { %299 = dma.done.wait [#allocation7], 128  }
   0xb   :  { %300 = vsyncadd [#allocation7], 4294967168  ;;  %v54_v0 = vlaneseq  ;;  %v45_v7 = vld [vmem:[#allocation3] sm:$0xff]  ;;  %v46_v8 = vld [vmem:[#allocation6] sm:$0xff]  ;;  %v305_v9 = vmov 1.0   ;;  %s306_s0 = smov [#allocation8]  }
   0xc   :  { %vm47_vm2 = vcmp.gt.f32.partialorder %v46_v8, 0.5  ;;  %s170_s1 = sshll.u32 %s306_s0, 4  ;;  %s172_s21 = sshll.u32 %s335_s2, 4  ;;  %s171_s1 = int_to_ptr.vmem [resolvable:$true] %s170_s1  ;;  %s173_s21 = int_to_ptr.hbm [resolvable:$true] %s172_s21 }
   0xd   :  { %v55_v1 = vshrl.u32 %v54_v0, 7  ;;  %v72_v2 = vand.u32 127, %v54_v0  ;;  %v48_v11 = vsel %vm47_vm2, -1e+30, %v45_v7 }
   0xe   :  { %49 = vmax.xlane.f32.xlu0 %v48_v11 }
   0xf   :  { %v70_v3 = vadd.s32 120, %v55_v1  ;;  %v69_v4 = vadd.s32 112, %v55_v1  ;;  %v68_v5 = vadd.s32 104, %v55_v1  ;;  %v67_v6 = vadd.s32 96, %v55_v1 }
  0x10   :  { %v66_v10 = vadd.s32 88, %v55_v1  ;;  %v65_v12 = vadd.s32 80, %v55_v1  ;;  %v64_v13 = vadd.s32 72, %v55_v1  ;;  %v63_v14 = vadd.s32 64, %v55_v1 }
  0x11   :  { %vm88_vm0 = vcmp.ge.s32.totalorder %v70_v3, %v72_v2  ;;  %vm87_vm1 = vcmp.ge.s32.totalorder %v69_v4, %v72_v2  ;;  %vm86_vm3 = vcmp.ge.s32.totalorder %v68_v5, %v72_v2  ;;  %vm85_vm4 = vcmp.ge.s32.totalorder %v67_v6, %v72_v2 }
  0x12   :  { %199 = vmatpush.msk.msra.mxu0 %vm88_vm0, %v305_v9  ;;  %vm84_vm5 = vcmp.ge.s32.totalorder %v66_v10, %v72_v2  ;;  %vm83_vm6 = vcmp.ge.s32.totalorder %v65_v12, %v72_v2  ;;  %vm82_vm7 = vcmp.ge.s32.totalorder %v64_v13, %v72_v2  ;;  %v62_v15 = vadd.s32 56, %v55_v1 }
  0x13   :  { %vm81_vm8 = vcmp.ge.s32.totalorder %v63_v14, %v72_v2  ;;  %v61_v16 = vadd.s32 48, %v55_v1  ;;  %v60_v17 = vadd.s32 40, %v55_v1  ;;  %v59_v18 = vadd.s32 32, %v55_v1 }
  0x14   :  { %200 = vmatpush.msk.msra.mxu0 %vm87_vm1, %v305_v9  ;;  %vm80_vm9 = vcmp.ge.s32.totalorder %v62_v15, %v72_v2  ;;  %v58_v19 = vadd.s32 24, %v55_v1  ;;  %v57_v20 = vadd.s32 16, %v55_v1  ;;  %v56_v21 = vadd.s32 8, %v55_v1 }
  0x15   :  { %vm79_vm10 = vcmp.ge.s32.totalorder %v61_v16, %v72_v2  ;;  %vm78_vm11 = vcmp.ge.s32.totalorder %v60_v17, %v72_v2  ;;  %vm77_vm12 = vcmp.ge.s32.totalorder %v59_v18, %v72_v2  ;;  %vm73_vm0 = vcmp.ge.s32.totalorder %v55_v1, %v72_v2 }
  0x16   :  { %201 = vmatpush.msk.msra.mxu0 %vm86_vm3, %v305_v9  ;;  %vm76_vm13 = vcmp.ge.s32.totalorder %v58_v19, %v72_v2  ;;  %vm75_vm14 = vcmp.ge.s32.totalorder %v57_v20, %v72_v2  ;;  %vm74_vm15 = vcmp.ge.s32.totalorder %v56_v21, %v72_v2  ;;  %vm163_vm1 = vcmask 0  }
  0x18   :  { %202 = vmatpush.msk.msra.mxu0 %vm85_vm4, %v305_v9 }
  0x1a   :  { %203 = vmatpush.msk.msra.mxu0 %vm84_vm5, %v305_v9 }
  0x1c   :  { %204 = vmatpush.msk.msra.mxu0 %vm83_vm6, %v305_v9 }
  0x1e   :  { %205 = vmatpush.msk.msra.mxu0 %vm82_vm7, %v305_v9 }
  0x20   :  { %206 = vmatpush.msk.msra.mxu0 %vm81_vm8, %v305_v9 }
  0x22   :  { %207 = vmatpush.msk.msra.mxu0 %vm80_vm9, %v305_v9 }
  0x24   :  { %208 = vmatpush.msk.msra.mxu0 %vm79_vm10, %v305_v9 }
  0x26   :  { %209 = vmatpush.msk.msra.mxu0 %vm78_vm11, %v305_v9 }
  0x28   :  { %210 = vmatpush.msk.msra.mxu0 %vm77_vm12, %v305_v9 }
  0x2a   :  { %211 = vmatpush.msk.msra.mxu0 %vm76_vm13, %v305_v9 }
  0x2c   :  { %212 = vmatpush.msk.msra.mxu0 %vm75_vm14, %v305_v9 }
  0x2e   :  { %213 = vmatpush.msk.msra.mxu0 %vm74_vm15, %v305_v9 }
  0x30   :  { %214 = vmatpush.msk.msra.mxu0 %vm73_vm0, %v305_v9 }
  0x81   :  { %v50_v22 = vpop.xlane.xlu0 %49 }
  0x82   :  { %v51_v23 = vsub.f32 %v48_v11, %v50_v22 }
  0x84   :  { %v52_v24 = vmul.f32 1.442695, %v51_v23 }
  0x86   :  { %221 = vpow2.f32 %v52_v24 }
  0x8c   :  { %v222_v25 = vpop.eup %221 }
  0x8d   :  { %137 = vmatmul.f32.vlgmr.msra.gmra.mxu0 %v222_v25 }
 0x10a   :  { %v138_v26 = vpop.f32.mrf.mxu0 }
 0x10b   :  { %v139_v27 = vadd.f32 1e-10, %v138_v26 }
 0x10d   :  { %223 = vlog2.f32 %v139_v27 }
 0x113   :  { %v224_v28 = vpop.eup %223 }
 0x114   :  { %v142_v29 = vmul.f32 0.6931472, %v224_v28 }
 0x116   :  { %v143_v30 = vsub.f32 %v142_v29, %v51_v23 }
 0x118   :  { %v144_v31 = vsel %vm47_vm2, 0.0, %v143_v30 }
 0x119   :  { %152 = vadd.xlane.f32.xlu0 %v144_v31 }
 0x18c   :  { %v153_v32 = vpop.xlane.xlu0 %152 }
 0x18d   :  { %v154_v33 = vrot.slane %v153_v32, 4 }
 0x18f   :  { %v155_v34 = vadd.f32 %v154_v33, %v153_v32 }
 0x191   :  { %v156_v35 = vrot.slane %v155_v34, 2 }
 0x193   :  { %v157_v36 = vadd.f32 %v156_v35, %v155_v34 }
 0x195   :  { %v158_v37 = vrot.slane %v157_v36, 1 }
 0x197   :  { %v159_v38 = vadd.f32 %v158_v37, %v157_v36 }
 0x199   :  { %215 = vpush %v159_v38 }
 0x1ca   :  { %s216_s22 = spop %215 }
 0x1cb   :  { %v161_v39 = vstv %s216_s22 }
 0x1cc   :  { %v162_v40 = vmul.f32 0.125, %v161_v39 }
 0x1ce   :  { %164 = vst.msk [vmem:[#allocation8] sm:$0x1] %vm163_vm1, %v162_v40 }
 0x1cf   :  { %175 = dma.vmem_to_hbm [thread:$0]  %s171_s1, 16, %s173_s21, [#allocation5]  }
 0x1d0   :  { %301 = dma.done.wait [#allocation5], 16  }
 0x1d1   :  { %302 = vsyncadd [#allocation5], 4294967280 }
 0x1d2   :  { %180 = vsyncpa [#allocation4], 1 }
 0x1d3   :  { %181 = vsyncpa [#allocation7], 1 }
 0x1d4   :  { %182 = vsyncpa [#allocation5], 1 }

</bundles_post_ra>
